<compile_context>
chip_gen: v6e
topology: v6e:2x2x1
jax: 0.10.0
libtpu: 0.0.40
codegen_flags: <defaults>
</compile_context>

<pallas_src>
import jax
import jax.numpy as jnp
from jax.experimental import pallas as pl
from jax.experimental.pallas import tpu as pltpu

_LANE = 128                     # vreg lane width
_SUBLANE = 8                    # vreg sublane count (32-bit)
_TARGET_BLOCK_ELEMS = 1 << 20   # ~4 MiB of f32 output per block per array


def _normalize_kernel(img_ref, scale_ref, bias_ref, out_ref):
    # img_ref:   (block_rows, block_cols) tile of the flattened image (native dtype)
    # scale_ref: (block_rows, 1) f32  -> per-row 1/std
    # bias_ref:  (block_rows, 1) f32  -> per-row -mean/std
    # out_ref:   (block_rows, block_cols) f32
    x = img_ref[...].astype(jnp.float32)
    out_ref[...] = (x * scale_ref[...] + bias_ref[...]).astype(out_ref.dtype)


def _round_up(x, m):
    return ((x + m - 1) // m) * m


def _pick_blocks(nc, hw, in_itemsize):
    """Choose a lane-dense (block_rows, block_cols) tile of ~_TARGET_BLOCK_ELEMS."""
    # dtype-aware row packing: 8 rows for 4-byte, 16 for 2-byte, 32 for 1-byte.
    row_mult = max(_SUBLANE, 32 // max(in_itemsize, 1))
    target = _TARGET_BLOCK_ELEMS

    # --- rows --------------------------------------------------------------
    if nc <= row_mult:
        block_rows = nc                                  # full dim: always legal
    else:
        cols_guess = min(hw, target)
        rows_fit = max(1, target // cols_guess)
        if nc <= rows_fit:
            block_rows = nc                              # full dim: always legal
        else:
            block_rows = max(row_mult, (rows_fit // row_mult) * row_mult)

    # --- columns, re-clipped against the chosen rows so the row floor can
    # --- never push a block past the budget --------------------------------
    cols_budget = max(_LANE, target // max(block_rows, 1))
    if hw <= cols_budget:
        block_cols = hw                                  # full dim: always legal
    else:
        block_cols = (cols_budget // _LANE) * _LANE      # lane-dense, unmasked stores

    # --- megacore (v7x): ensure at least one parallel axis has >= 2 steps ---
    if pl.cdiv(nc, block_rows) < 2 and pl.cdiv(hw, block_cols) < 2:
        if hw >= 2 * _LANE:
            block_cols = _round_up((hw + 1) // 2, _LANE)
        elif nc >= 2 * row_mult:
            block_rows = _round_up((nc + 1) // 2, row_mult)
        # else: too small to split legally; a (1,1) grid is fine.

    return block_rows, block_cols


@jax.jit
def normalize_image(image: jax.Array, mean: jax.Array, std: jax.Array) -> jax.Array:
    """(image - mean[None,:,None,None]) / std[None,:,None,None] via Pallas (f32 out)."""
    N, C, H, W = image.shape
    assert mean.shape == (C,) and std.shape == (C,)

    nc, hw = N * C, H * W

    # Per-channel FMA coefficients, expanded to one scalar per (n, c) row of
    # the flattened (N*C, H*W) image.
    scale = (1.0 / std).astype(jnp.float32)              # 1/std
    bias = (-mean / std).astype(jnp.float32)             # -mean/std
    scale_rows = jnp.tile(scale, N).reshape(nc, 1)
    bias_rows = jnp.tile(bias, N).reshape(nc, 1)
    img2d = image.reshape(nc, hw)

    itemsize = jnp.dtype(image.dtype).itemsize
    block_rows, block_cols = _pick_blocks(nc, hw, itemsize)
    grid = (pl.cdiv(nc, block_rows), pl.cdiv(hw, block_cols))

    # Explicit scoped-VMEM budget: double-buffered input + output blocks plus
    # the (lane-padded) scale/bias rows, with a few MiB of headroom. Stays
    # well under 64 MiB physical VMEM on v7x and under v5e/v6e defaults.
    in_block_bytes = block_rows * block_cols * itemsize
    out_block_bytes = block_rows * block_cols * 4
    sb_block_bytes = 2 * _round_up(block_rows, _SUBLANE) * _LANE * 4
    vmem_limit = int(2 * (in_block_bytes + out_block_bytes + sb_block_bytes) + (4 << 20))

    out2d = pl.pallas_call(
        _normalize_kernel,
        out_shape=jax.ShapeDtypeStruct((nc, hw), jnp.float32),
        grid=grid,
        in_specs=[
            pl.BlockSpec((block_rows, block_cols), lambda i, j: (i, j)),
            pl.BlockSpec((block_rows, 1), lambda i, j: (i, 0)),
            pl.BlockSpec((block_rows, 1), lambda i, j: (i, 0)),
        ],
        out_specs=pl.BlockSpec((block_rows, block_cols), lambda i, j: (i, j)),
        compiler_params=pltpu.CompilerParams(
            dimension_semantics=("parallel", "parallel"),
            vmem_limit_bytes=vmem_limit),
    )(img2d, scale_rows, bias_rows)

    return out2d.reshape(N, C, H, W)


class Normalize:
    """JAX/Pallas equivalent of the PyTorch Normalize module (operates on a dict)."""

    def __init__(self, mean, std):
        self.mean = jnp.asarray(mean, dtype=jnp.float32)
        self.std = jnp.asarray(std, dtype=jnp.float32)

    def __call__(self, batch):
        batch = dict(batch)
        # Pass the image in its native dtype; the kernel casts in VMEM.
        batch["image"] = normalize_image(batch["image"], self.mean, self.std)
        return batch


if __name__ == "__main__":
    key = jax.random.PRNGKey(0)
    N, C, H, W = 2, 4, 16, 16  # small NCHW example

    mean = jnp.array([0.485, 0.456, 0.406, 0.5], dtype=jnp.float32)
    std = jnp.array([0.229, 0.224, 0.225, 0.25], dtype=jnp.float32)
    norm = Normalize(mean, std)

    # --- float32 input path ---
    k1, k2 = jax.random.split(key)
    image_f32 = jax.random.uniform(k1, (N, C, H, W), dtype=jnp.float32)
    out_f32 = norm({"image": image_f32})["image"]
    jax.block_until_ready(out_f32)
    ref_f32 = (image_f32 - mean[None, :, None, None]) / std[None, :, None, None]
    assert jnp.allclose(out_f32, ref_f32, atol=1e-5, rtol=1e-5), "f32 mismatch vs reference"

    # --- uint8 input path (native dtype into the kernel, cast in VMEM) ---
    image_u8 = jax.random.randint(k2, (N, C, H, W), 0, 256, dtype=jnp.int32).astype(jnp.uint8)
    out_u8 = norm({"image": image_u8})["image"]
    jax.block_until_ready(out_u8)
    ref_u8 = (image_u8.astype(jnp.float32) - mean[None, :, None, None]) / std[None, :, None, None]
    assert jnp.allclose(out_u8, ref_u8, atol=1e-4, rtol=1e-5), "uint8 mismatch vs reference"

    print("KERNEL_OK")
</pallas_src>

<mosaic_0001>
module attributes {stable_mosaic.version = 11 : i64} {
  func.func @_normalize_kernel(%arg0: i32, %arg1: i32, %arg2: memref<8x128xf32, #tpu.memory_space<vmem>>, %arg3: memref<8x1xf32, #tpu.memory_space<vmem>>, %arg4: memref<8x1xf32, #tpu.memory_space<vmem>>, %arg5: memref<8x128xf32, #tpu.memory_space<vmem>>) attributes {dimension_semantics = [#tpu.dimension_semantics<parallel>, #tpu.dimension_semantics<parallel>], iteration_bounds = array<i64: 1, 2>, scalar_prefetch = 0 : i64, scratch_operands = 0 : i64, tpu.core_type = #tpu.core_type<tc>, window_params = [{transform_indices = @transform_0, window_bounds = array<i64: 8, 128>}, {transform_indices = @transform_1, window_bounds = array<i64: 8, 1>}, {transform_indices = @transform_2, window_bounds = array<i64: 8, 1>}, {transform_indices = @transform_3, window_bounds = array<i64: 8, 128>}]} {
    %c0 = arith.constant 0 : index
    %c0_0 = arith.constant 0 : index
    %0 = vector.load %arg2[%c0, %c0_0] : memref<8x128xf32, #tpu.memory_space<vmem>>, vector<8x128xf32>
    %c0_1 = arith.constant 0 : index
    %c0_2 = arith.constant 0 : index
    %1 = vector.load %arg3[%c0_1, %c0_2] : memref<8x1xf32, #tpu.memory_space<vmem>>, vector<8x1xf32>
    %2 = vector.broadcast %1 : vector<8x1xf32> to vector<8x128xf32>
    %3 = arith.mulf %0, %2 : vector<8x128xf32>
    %c0_3 = arith.constant 0 : index
    %c0_4 = arith.constant 0 : index
    %4 = vector.load %arg4[%c0_3, %c0_4] : memref<8x1xf32, #tpu.memory_space<vmem>>, vector<8x1xf32>
    %5 = vector.broadcast %4 : vector<8x1xf32> to vector<8x128xf32>
    %6 = arith.addf %3, %5 : vector<8x128xf32>
    %c0_5 = arith.constant 0 : index
    %c0_6 = arith.constant 0 : index
    %7 = vector.load %arg5[%c0_5, %c0_6] : memref<8x128xf32, #tpu.memory_space<vmem>>, vector<8x128xf32>
    tpu.vector_store %arg5[%c0_5, %c0_6], %6 {strides = array<i32>} : memref<8x128xf32, #tpu.memory_space<vmem>>, vector<8x128xf32>,
    return
  }
  func.func @transform_0(%arg0: i32, %arg1: i32) -> (i32, i32) {
    %c0_i32 = arith.constant 0 : i32
    return %arg0, %arg1 : i32, i32
  }
  func.func @transform_1(%arg0: i32, %arg1: i32) -> (i32, i32) {
    %c0_i32 = arith.constant 0 : i32
    %c0_i32_0 = arith.constant 0 : i32
    return %arg0, %c0_i32 : i32, i32
  }
  func.func @transform_2(%arg0: i32, %arg1: i32) -> (i32, i32) {
    %c0_i32 = arith.constant 0 : i32
    %c0_i32_0 = arith.constant 0 : i32
    return %arg0, %c0_i32 : i32, i32
  }
  func.func @transform_3(%arg0: i32, %arg1: i32) -> (i32, i32) {
    %c0_i32 = arith.constant 0 : i32
    return %arg0, %arg1 : i32, i32
  }
}

</mosaic_0001>

<bundles_post_ra>
// kernel: tile.0
= control target key start
LH: loop header
LB: loop body
LE: loop exit
PB: predicated region body
PF: predicated region fallthrough
CT: control target
= control target key end

     0   :  { %s35_s8 = smov 125   ;;  %vm8_vm0 = vcmask 7168   ;;  %s36_s11 = smov 126   ;;  %s62_s0 = inlined_call_operand.vmem [shape: f32[2,4], index: 0, kind: input, shape index: {}]   ;;  %s63_s1 = inlined_call_operand.vmem [shape: f32[8,1], index: 1, kind: output, shape index: {}]  }
   0x1   :  { %v5_v0 = vld [vmem:[%s62_s0] sm:$0x3]  ;;  %s34_s0 = smov 127  }
   0x2   :  { %6 = vst [vmem:[#allocation0] sm:$0x3] %v5_v0 }
   0x9   :  { %v10_v1 = vld [vmem:[#allocation0] sm:$0x3]  }
   0xa   :  { %v22_v2 = vld [vmem:[#allocation0] sm:$0x3]   ;;  %11 = vrot.lane.b32.xlu0 %v10_v1, %s34_s0 }
   0xb   :  { %23 = vrot.lane.b32.xlu1 %v22_v2, %s35_s8  ;;  %v7_v3 = vld [vmem:[#allocation0] sm:$0x3]  }
   0xc   :  { %v16_v4 = vld [vmem:[#allocation0] sm:$0x3]   ;;  %9 = vst.msk [vmem:[%s63_s1] ss:$4 sm:$0x3] %vm8_vm0, %v7_v3  }
   0xe   :  { %17 = vrot.lane.b32.xlu0 %v16_v4, %s36_s11 }
  0x7c   :  { %v12_v5 = vpop.permute.xlu0 %11  }
  0x7d   :  { %v24_v6 = vpop.permute.xlu1 %23   ;;  %28 = vst.msk [vmem:[%s63_s1 + $0x1] ss:$4 sm:$0x3] %vm8_vm0, %v12_v5  }
  0x7e   :  { %30 = vst.msk [vmem:[%s63_s1 + $0x3] ss:$4 sm:$0x3] %vm8_vm0, %v24_v6  }
  0x80   :  { %v18_v7 = vpop.permute.xlu0 %17  }
  0x81   :  { %29 = vst.msk [vmem:[%s63_s1 + $0x2] ss:$4 sm:$0x3] %vm8_vm0, %v18_v7  }

// kernel: tile.18
= control target key start
LH: loop header
LB: loop body
LE: loop exit
PB: predicated region body
PF: predicated region fallthrough
CT: control target
= control target key end

     0   :  { %s22_s0 = inlined_call_operand.vmem [shape: f32[4], index: 0, kind: input, shape index: {}]   ;;  %s23_s1 = inlined_call_operand.vmem [shape: f32[2,4], index: 1, kind: output, shape index: {}]  }
   0x1   :  { %v4_v0 = vld [vmem:[%s22_s0] ss:$0 sm:$0xff] }
   0x2   :  { %5 = vst [vmem:[%s23_s1] sm:$0x3] %v4_v0 }

// kernel: normalize_image.1
= control target key start
LH: loop header
LB: loop body
LE: loop exit
PB: predicated region body
PF: predicated region fallthrough
CT: control target
= control target key end

     0   :  { %s448_s12 = smov 0   ;;  %s450_s13 = smov 0   ;;  %s480_s0 = inlined_call_operand.vmem [shape: f32[8,256], index: 0, kind: input, shape index: {}]   ;;  %s481_s1 = inlined_call_operand.vmem [shape: f32[8,1], index: 1, kind: input, shape index: {}]   ;;  %s482_s2 = inlined_call_operand.vmem [shape: f32[8,1], index: 2, kind: input, shape index: {}]   ;;  %s483_s3 = inlined_call_operand.vmem [shape: f32[8,256], index: 3, kind: output, shape index: {}]  }
   0x1   :  { %s452_s14 = smov 0  }
   0x2 LB: > { %s22_s15 = sadd.s32 1, %s421_s13  ;;  %p372_p0 = scmp.ge.s32.totalorder %s425_s14, 1  ;;  %s425_s14 = sphi %s452_s14, %s13_s14   ;;  %s421_s13 = sphi %s450_s13, %s485_s13   ;;  %s417_s12 = sphi %s448_s12, %s484_s12  }
   0x3   : > { %p23_p1 = scmp.ge.s32.totalorder %s22_s15, 2  ;;  %p174_p2 = scmp.lt.s32.totalorder %s425_s14, 3 }
   0x5   : > { %s487_s15 = smov (%p23_p1, %s22_s15), 0  ;;  %p175_p3 = pnand %p372_p0, %p174_p2 }
   0x6   : > { %p214_p4 = scmp.lt.s32.totalorder (!%p175_p3), %s417_s12, 1 }
   0x7   : > { %178 = sbr.rel (%p175_p3) target bundleno = 145 (0x91), region = 32 }
   0xc   : > { %v237_v0 = vld [vmem:[%s481_s1] sm:$0xff]  ;;  %v427_v1 = vmov 0   ;;  %s489_s12 = smov (!%p214_p4, %s417_s12), 1 }
   0xd   : > { %402 = vset.pattern.permute.xlu0 %v427_v1  ;;  %v244_v2 = vld [vmem:[%s482_s2] sm:$0xff]  ;;  %s373_s20 = sshll.u32 %s489_s12, 3 }
   0xe   : > { %240 = vperm.xlu0 %402, %v237_v0   ;;  %s219_s23 = scalar_lea.vmem %s480_s0, %s373_s20  ;;  %s235_s26 = scalar_lea.vmem %s483_s3, %s373_s20 }
   0xf   : > { %v236_v4 = vld [vmem:[%s219_s23] sm:$0xff] }
  0x12   : > { %247 = vperm.xlu0 %402, %v244_v2  }
  0x89   : > { %v241_v3 = vpop.permute.xlu0 %240 }
  0x8a   : > { %v243_v5 = vmul.f32 %v241_v3, %v236_v4 }
  0x8d   : > { %v248_v6 = vpop.permute.xlu0 %247 }
  0x8e   : > { %v250_v7 = vadd.f32 %v248_v6, %v243_v5 }
  0x90   : > { %251 = vst [vmem:[%s235_s26] sm:$0xff] %v250_v7 }
  0x91 PF: > { %s13_s14 = sadd.s32 1, %s425_s14   ;;  %s484_s12 = smov %s421_s13 }
  0x92   : > { %p10_p5 = scmp.ge.s32.totalorder %s13_s14, 4   ;;  %s485_s13 = smov %s487_s15 }
  0x94   :  { %12 = sbr.rel (!%p10_p5) target bundleno = 2 (0x2), region = 68 }

</bundles_post_ra>
